<compile_context>
chip_gen: v7x
topology: tpu7x:2x2x1
jax: 0.10.0
libtpu: 0.0.40
codegen_flags: <defaults>
</compile_context>

<pallas_src>
import jax
import jax.numpy as jnp
from jax.experimental import pallas as pl
from jax.experimental.pallas import tpu as pltpu


def _pick_group_size(num_graphs, nodes_per_graph):
    """Graphs per grid step: aim for >=256 stacked node rows per step (fills the
    256-row MXU on v6e/v7x, >=2 full tiles on v5e) while keeping the grid even."""
    target_rows = 256
    G = min(num_graphs, max(1, -(-target_rows // nodes_per_graph)))
    while G < num_graphs and (num_graphs % G or (G * nodes_per_graph) % 8 or G % 8):
        G += 1
    return min(G, num_graphs)


def classifier_forward(adj_bd, h0, w1, b1, w2, b2, wc, bc, *,
                       nodes_per_graph, n_classes):
    """Forward pass of the GCN classifier on a batched graph.

    adj_bd: (S, Gn, Gn) bf16 — block-diagonal row-normalized mean adjacency
            (adj[v,u] = 1/in_deg(v) iff edge u->v; identity row if in_deg==0),
            G graphs of `nodes_per_graph` nodes stacked per grid step.
    h0:     (S, Gn, in_pad) bf16 — stacked, zero-padded node features.
    w1:(in_pad,Hp) w2:(Hp,Hp) wc:(Hp,Cp) bf16;  b1/b2:(1,Hp) bc:(1,Cp) f32.
    Returns (S*G, n_classes) f32 logits.
    """
    S, Gn, in_pad = h0.shape
    n = nodes_per_graph
    G = Gn // n
    Hp = w2.shape[1]
    Cp = wc.shape[1]

    def kernel(adj_ref, h0_ref, w1_ref, b1_ref, w2_ref, b2_ref, wc_ref, bc_ref,
               out_ref):
        adj = adj_ref[...]                                    # (Gn, Gn) bf16, reused by both layers

        # Layer 1: apply W1 to the lane-dense stacked rows first
        # ((adj @ X) @ W == adj @ (X @ W)), then one block-diagonal mean
        # aggregation — no lane-sparse (Gn, in_pad) intermediate on the MXU path.
        z1 = jnp.dot(h0_ref[...], w1_ref[...],
                     preferred_element_type=jnp.float32)       # (Gn, Hp) f32
        h1 = jnp.maximum(
            jnp.dot(adj, z1.astype(jnp.bfloat16),
                    preferred_element_type=jnp.float32) + b1_ref[...], 0.0)

        # Layer 2: the dominant Hp x Hp weight matmul sees all Gn stacked rows.
        z2 = jnp.dot(h1.astype(jnp.bfloat16), w2_ref[...],
                     preferred_element_type=jnp.float32)       # (Gn, Hp) f32
        h2 = jnp.maximum(
            jnp.dot(adj, z2.astype(jnp.bfloat16),
                    preferred_element_type=jnp.float32) + b2_ref[...], 0.0)

        # dgl.mean_nodes: per-graph mean over node rows as a VPU/XLU reduction
        # (no 1-sublane MXU push, no pool-row input stream, stays in f32).
        hg = jnp.sum(h2.reshape(G, n, Hp), axis=1) * jnp.float32(1.0 / n)   # (G, Hp)

        # Classifier once on the stacked pooled matrix -> sublane- and
        # lane-dense (G, Cp) output tile (full unmasked store).
        out_ref[...] = (jnp.dot(hg.astype(jnp.bfloat16), wc_ref[...],
                                preferred_element_type=jnp.float32)
                        + bc_ref[...])

    flops_per_step = (2 * Gn * in_pad * Hp        # X @ W1
                      + 2 * Gn * Gn * Hp          # adj @ z1
                      + 2 * Gn * Hp * Hp          # h1 @ W2
                      + 2 * Gn * Gn * Hp          # adj @ z2
                      + 2 * G * Hp * Cp)          # classifier
    operands = (adj_bd, h0, w1, b1, w2, b2, wc, bc)
    bytes_accessed = (sum(int(x.size) * x.dtype.itemsize for x in operands)
                      + S * G * Cp * 4)

    # Re-derived VMEM budget: per-step streamed blocks (double-buffered) plus
    # generous headroom for activations/scratch — far inside v7x's 64 MiB.
    per_step_bytes = (Gn * Gn * 2 + Gn * in_pad * 2 + in_pad * Hp * 2
                      + Hp * Hp * 2 + Hp * Cp * 2 + 2 * Hp * 4 + Cp * 4
                      + G * Cp * 4)
    vmem_limit = min(max(8 * per_step_bytes, 4 * 1024 * 1024), 32 * 1024 * 1024)

    grid_spec = pltpu.PrefetchScalarGridSpec(
        num_scalar_prefetch=0,
        grid=(S,),
        in_specs=[
            pl.BlockSpec((None, Gn, Gn),     lambda s: (s, 0, 0)),  # block-diag adjacency
            pl.BlockSpec((None, Gn, in_pad), lambda s: (s, 0, 0)),  # stacked node features
            pl.BlockSpec((in_pad, Hp),       lambda s: (0, 0)),     # W1 (grid-invariant)
            pl.BlockSpec((1, Hp),            lambda s: (0, 0)),     # b1
            pl.BlockSpec((Hp, Hp),           lambda s: (0, 0)),     # W2
            pl.BlockSpec((1, Hp),            lambda s: (0, 0)),     # b2
            pl.BlockSpec((Hp, Cp),           lambda s: (0, 0)),     # Wc
            pl.BlockSpec((1, Cp),            lambda s: (0, 0)),     # bc
        ],
        out_specs=pl.BlockSpec((None, G, Cp), lambda s: (s, 0, 0)),
    )

    out = pl.pallas_call(
        kernel,
        out_shape=jax.ShapeDtypeStruct((S, G, Cp), jnp.float32),
        grid_spec=grid_spec,
        compiler_params=pltpu.CompilerParams(
            # Tiny grid: keep a whole step on one TensorCore; a forced megacore
            # split would only duplicate weight DMAs and add cross-core sync.
            dimension_semantics=("arbitrary",),
            vmem_limit_bytes=vmem_limit,
        ),
        cost_estimate=pl.CostEstimate(
            flops=S * flops_per_step,
            transcendentals=0,
            bytes_accessed=bytes_accessed,
        ),
    )(*operands)
    return out.reshape(S * G, Cp)[:, :n_classes]


def build_batched_graph_blocks(nodes_per_graph, num_graphs):
    """Per-graph dense adjacency blocks: each graph is a directed cycle plus one
    chord.  adj[g, v, u] = 1.0 iff edge u -> v exists in graph g."""
    n = nodes_per_graph
    adj = jnp.zeros((num_graphs, n, n), dtype=jnp.float32)
    for g in range(num_graphs):
        for i in range(n):
            adj = adj.at[g, (i + 1) % n, i].set(1.0)          # cycle edge i -> i+1
        src = g % n
        dst = (src + n // 2) % n
        adj = adj.at[g, dst, src].set(1.0)                    # per-graph chord
    return adj


def torch_linear_init(key, in_feats, out_feats):
    """Deterministic init matching nn.Linear default: U(-1/sqrt(fan_in), +1/sqrt(fan_in))."""
    kw, kb = jax.random.split(key)
    bound = 1.0 / jnp.sqrt(jnp.float32(in_feats))
    w = jax.random.uniform(kw, (out_feats, in_feats), jnp.float32, -bound, bound)
    b = jax.random.uniform(kb, (out_feats,), jnp.float32, -bound, bound)
    return w, b


if __name__ == "__main__":
    # Small shapes consistent with the module: 2 graphs x 8 nodes, in_dim=1,
    # hidden_dim=32, n_classes=4 (zero-padded to lane-dense 8/128/128 internally).
    nodes_per_graph, num_graphs = 8, 2
    in_dim, hidden_dim, n_classes = 1, 32, 4
    IN_PAD, H_PAD, C_PAD = 8, 128, 128
    n, B = nodes_per_graph, num_graphs
    bf16, f32 = jnp.bfloat16, jnp.float32

    adj = build_batched_graph_blocks(n, B)                      # (B, n, n) f32

    # h = g.in_degrees().view(-1, 1).float()
    indeg = jnp.sum(adj, axis=2)                                # (B, n)
    h0 = indeg[..., None]                                       # (B, n, 1) f32

    # Row-normalized "mean over mailbox" adjacency; identity row for zero in-degree
    # nodes (DGL leaves 'h' untouched when a node receives no messages).
    safe_deg = jnp.where(indeg > 0, indeg, 1.0)
    adj_mean = adj / safe_deg[..., None]
    eye = jnp.broadcast_to(jnp.eye(n, dtype=f32), (B, n, n))
    adj_mean = jnp.where((indeg > 0)[..., None], adj_mean, eye)

    # --- group graphs per grid step and build block-diagonal adjacency -------
    # TODO(synk): variable node counts per graph would need per-graph node-count
    # scalars (scalar prefetch) + masking; uniform n is assumed here.
    G = _pick_group_size(B, n)          # whole batch per step here (G = B = 2)
    S = B // G
    Gn = G * n
    adj_bd = jnp.zeros((S, Gn, Gn), f32)
    for s in range(S):
        for g in range(G):
            adj_bd = adj_bd.at[s, g * n:(g + 1) * n, g * n:(g + 1) * n].set(
                adj_mean[s * G + g])

    # Stacked, zero-padded node features: (S, Gn, IN_PAD).
    h0_grp = jnp.zeros((S, Gn, IN_PAD), f32).at[:, :, :in_dim].set(
        h0.reshape(S, Gn, in_dim))

    # Deterministic parameters (nn.Linear-style init), zero-padded to lane-dense
    # sizes (numerically exact: padded channels stay 0 through ReLU).
    key = jax.random.PRNGKey(0)
    k1, k2, k3 = jax.random.split(key, 3)
    w1, b1 = torch_linear_init(k1, in_dim, hidden_dim)          # (H, 1), (H,)
    w2, b2 = torch_linear_init(k2, hidden_dim, hidden_dim)      # (H, H), (H,)
    wc, bc = torch_linear_init(k3, hidden_dim, n_classes)       # (C, H), (C,)

    w1_pad = jnp.zeros((IN_PAD, H_PAD), f32).at[:in_dim, :hidden_dim].set(w1.T)
    b1_pad = jnp.zeros((1, H_PAD), f32).at[0, :hidden_dim].set(b1)
    w2_pad = jnp.zeros((H_PAD, H_PAD), f32).at[:hidden_dim, :hidden_dim].set(w2.T)
    b2_pad = jnp.zeros((1, H_PAD), f32).at[0, :hidden_dim].set(b2)
    wc_pad = jnp.zeros((H_PAD, C_PAD), f32).at[:hidden_dim, :n_classes].set(wc.T)
    bc_pad = jnp.zeros((1, C_PAD), f32).at[0, :n_classes].set(bc)

    out = classifier_forward(
        adj_bd.astype(bf16), h0_grp.astype(bf16),
        w1_pad.astype(bf16), b1_pad,
        w2_pad.astype(bf16), b2_pad,
        wc_pad.astype(bf16), bc_pad,
        nodes_per_graph=n, n_classes=n_classes,
    )
    out = jax.block_until_ready(out)

    # Precision-matched pure-JAX reference (same bf16 operands, f32 accumulation,
    # same weight-then-aggregate order, f32 bias/ReLU/pool), following the DGL
    # forward: h1 = relu(W1 @ mean_nbr(h0) + b1); h2 = relu(W2 @ mean_nbr(h1) + b2);
    # out = Wc @ mean_nodes(h2) + bc.
    adj_bf = adj_mean.astype(bf16)                               # (B, n, n)
    h0_bf = h0_grp.reshape(B, n, IN_PAD).astype(bf16)
    w1_bf, w2_bf, wc_bf = (w1_pad.astype(bf16), w2_pad.astype(bf16),
                           wc_pad.astype(bf16))
    z1 = jnp.einsum("bnk,kh->bnh", h0_bf, w1_bf, preferred_element_type=f32)
    h1_r = jnp.maximum(jnp.einsum("bij,bjh->bih", adj_bf, z1.astype(bf16),
                                  preferred_element_type=f32) + b1_pad[None], 0.0)
    z2 = jnp.einsum("bnh,hk->bnk", h1_r.astype(bf16), w2_bf,
                    preferred_element_type=f32)
    h2_r = jnp.maximum(jnp.einsum("bij,bjh->bih", adj_bf, z2.astype(bf16),
                                  preferred_element_type=f32) + b2_pad[None], 0.0)
    hg_r = jnp.sum(h2_r, axis=1) * (1.0 / n)                     # (B, H_PAD) f32
    ref = (jnp.einsum("bh,hc->bc", hg_r.astype(bf16), wc_bf,
                      preferred_element_type=f32) + bc_pad)[:, :n_classes]

    assert out.shape == (B, n_classes)
    assert jnp.allclose(out, ref, atol=2e-3, rtol=2e-3), (out, ref)

    print("KERNEL_OK")
</pallas_src>

<mosaic_0001>
module attributes {stable_mosaic.version = 11 : i64} {
  func.func @kernel(%arg0: i32, %arg1: memref<1x16x16xbf16, #tpu.memory_space<vmem>>, %arg2: memref<1x16x8xbf16, #tpu.memory_space<vmem>>, %arg3: memref<8x128xbf16, #tpu.memory_space<vmem>>, %arg4: memref<1x128xf32, #tpu.memory_space<vmem>>, %arg5: memref<128x128xbf16, #tpu.memory_space<vmem>>, %arg6: memref<1x128xf32, #tpu.memory_space<vmem>>, %arg7: memref<128x128xbf16, #tpu.memory_space<vmem>>, %arg8: memref<1x128xf32, #tpu.memory_space<vmem>>, %arg9: memref<1x2x128xf32, #tpu.memory_space<vmem>>) attributes {dimension_semantics = [#tpu.dimension_semantics<arbitrary>], iteration_bounds = array<i64: 1>, scalar_prefetch = 0 : i64, scratch_operands = 0 : i64, tpu.core_type = #tpu.core_type<tc>, window_params = [{transform_indices = @transform_0, window_bounds = array<i64: 1, 16, 16>}, {transform_indices = @transform_1, window_bounds = array<i64: 1, 16, 8>}, {pipeline_mode = #tpu.pipeline_mode<synchronous>, transform_indices = @transform_2, window_bounds = array<i64: 8, 128>}, {pipeline_mode = #tpu.pipeline_mode<synchronous>, transform_indices = @transform_3, window_bounds = array<i64: 1, 128>}, {pipeline_mode = #tpu.pipeline_mode<synchronous>, transform_indices = @transform_4, window_bounds = array<i64: 128, 128>}, {pipeline_mode = #tpu.pipeline_mode<synchronous>, transform_indices = @transform_5, window_bounds = array<i64: 1, 128>}, {pipeline_mode = #tpu.pipeline_mode<synchronous>, transform_indices = @transform_6, window_bounds = array<i64: 128, 128>}, {pipeline_mode = #tpu.pipeline_mode<synchronous>, transform_indices = @transform_7, window_bounds = array<i64: 1, 128>}, {transform_indices = @transform_8, window_bounds = array<i64: 1, 2, 128>}]} {
    %c0 = arith.constant 0 : index
    %c0_0 = arith.constant 0 : index
    %c0_1 = arith.constant 0 : index
    %0 = vector.load %arg1[%c0, %c0_0, %c0_1] : memref<1x16x16xbf16, #tpu.memory_space<vmem>>, vector<1x16x16xbf16>
    %1 = vector.shape_cast %0 : vector<1x16x16xbf16> to vector<16x16xbf16>
    %c0_2 = arith.constant 0 : index
    %c0_3 = arith.constant 0 : index
    %c0_4 = arith.constant 0 : index
    %2 = vector.load %arg2[%c0_2, %c0_3, %c0_4] : memref<1x16x8xbf16, #tpu.memory_space<vmem>>, vector<1x16x8xbf16>
    %3 = vector.shape_cast %2 : vector<1x16x8xbf16> to vector<16x8xbf16>
    %c0_5 = arith.constant 0 : index
    %c0_6 = arith.constant 0 : index
    %4 = vector.load %arg3[%c0_5, %c0_6] : memref<8x128xbf16, #tpu.memory_space<vmem>>, vector<8x128xbf16>
    %cst = arith.constant dense<0.000000e+00> : vector<16x128xf32>
    %5 = tpu.matmul %3, %4, %cst {dimension_numbers = #tpu.dot_dimension_numbers<[1], [0], [0], [1], [0, 0, 1, 1], [], []>} : vector<16x8xbf16>, vector<8x128xbf16>, vector<16x128xf32> -> vector<16x128xf32>
    %6 = arith.truncf %5 : vector<16x128xf32> to vector<16x128xbf16>
    %cst_7 = arith.constant dense<0.000000e+00> : vector<16x128xf32>
    %7 = tpu.matmul %1, %6, %cst_7 {dimension_numbers = #tpu.dot_dimension_numbers<[1], [0], [0], [1], [0, 0, 1, 1], [], []>} : vector<16x16xbf16>, vector<16x128xbf16>, vector<16x128xf32> -> vector<16x128xf32>
    %c0_8 = arith.constant 0 : index
    %c0_9 = arith.constant 0 : index
    %8 = vector.load %arg4[%c0_8, %c0_9] : memref<1x128xf32, #tpu.memory_space<vmem>>, vector<1x128xf32>
    %9 = vector.broadcast %8 : vector<1x128xf32> to vector<16x128xf32>
    %10 = arith.addf %7, %9 : vector<16x128xf32>
    %cst_10 = arith.constant 0.000000e+00 : f32
    %11 = vector.broadcast %cst_10 : f32 to vector<16x128xf32>
    %12 = arith.maximumf %10, %11 : vector<16x128xf32>
    %13 = arith.truncf %12 : vector<16x128xf32> to vector<16x128xbf16>
    %c0_11 = arith.constant 0 : index
    %c0_12 = arith.constant 0 : index
    %14 = vector.load %arg5[%c0_11, %c0_12] : memref<128x128xbf16, #tpu.memory_space<vmem>>, vector<128x128xbf16>
    %cst_13 = arith.constant dense<0.000000e+00> : vector<16x128xf32>
    %15 = tpu.matmul %13, %14, %cst_13 {dimension_numbers = #tpu.dot_dimension_numbers<[1], [0], [0], [1], [0, 0, 1, 1], [], []>} : vector<16x128xbf16>, vector<128x128xbf16>, vector<16x128xf32> -> vector<16x128xf32>
    %16 = arith.truncf %15 : vector<16x128xf32> to vector<16x128xbf16>
    %cst_14 = arith.constant dense<0.000000e+00> : vector<16x128xf32>
    %17 = tpu.matmul %1, %16, %cst_14 {dimension_numbers = #tpu.dot_dimension_numbers<[1], [0], [0], [1], [0, 0, 1, 1], [], []>} : vector<16x16xbf16>, vector<16x128xbf16>, vector<16x128xf32> -> vector<16x128xf32>
    %c0_15 = arith.constant 0 : index
    %c0_16 = arith.constant 0 : index
    %18 = vector.load %arg6[%c0_15, %c0_16] : memref<1x128xf32, #tpu.memory_space<vmem>>, vector<1x128xf32>
    %19 = vector.broadcast %18 : vector<1x128xf32> to vector<16x128xf32>
    %20 = arith.addf %17, %19 : vector<16x128xf32>
    %cst_17 = arith.constant 0.000000e+00 : f32
    %21 = vector.broadcast %cst_17 : f32 to vector<16x128xf32>
    %22 = arith.maximumf %20, %21 : vector<16x128xf32>
    %23 = vector.shape_cast %22 : vector<16x128xf32> to vector<2x8x128xf32>
    %cst_18 = arith.constant dense<0.000000e+00> : vector<2x128xf32>
    %24 = vector.multi_reduction <add>, %23, %cst_18 [1] : vector<2x8x128xf32> to vector<2x128xf32>
    %cst_19 = arith.constant 1.250000e-01 : f32
    %25 = vector.broadcast %cst_19 : f32 to vector<2x128xf32>
    %26 = arith.mulf %24, %25 : vector<2x128xf32>
    %27 = arith.truncf %26 : vector<2x128xf32> to vector<2x128xbf16>
    %c0_20 = arith.constant 0 : index
    %c0_21 = arith.constant 0 : index
    %28 = vector.load %arg7[%c0_20, %c0_21] : memref<128x128xbf16, #tpu.memory_space<vmem>>, vector<128x128xbf16>
    %cst_22 = arith.constant dense<0.000000e+00> : vector<2x128xf32>
    %29 = tpu.matmul %27, %28, %cst_22 {dimension_numbers = #tpu.dot_dimension_numbers<[1], [0], [0], [1], [0, 0, 1, 1], [], []>} : vector<2x128xbf16>, vector<128x128xbf16>, vector<2x128xf32> -> vector<2x128xf32>
    %c0_23 = arith.constant 0 : index
    %c0_24 = arith.constant 0 : index
    %30 = vector.load %arg8[%c0_23, %c0_24] : memref<1x128xf32, #tpu.memory_space<vmem>>, vector<1x128xf32>
    %31 = vector.broadcast %30 : vector<1x128xf32> to vector<2x128xf32>
    %32 = arith.addf %29, %31 : vector<2x128xf32>
    %c0_25 = arith.constant 0 : index
    %c0_26 = arith.constant 0 : index
    %c0_27 = arith.constant 0 : index
    %33 = vector.load %arg9[%c0_25, %c0_26, %c0_27] : memref<1x2x128xf32, #tpu.memory_space<vmem>>, vector<1x2x128xf32>
    %34 = vector.shape_cast %33 : vector<1x2x128xf32> to vector<2x128xf32>
    %35 = vector.shape_cast %32 : vector<2x128xf32> to vector<1x2x128xf32>
    tpu.vector_store %arg9[%c0_25, %c0_26, %c0_27], %35 {strides = array<i32>} : memref<1x2x128xf32, #tpu.memory_space<vmem>>, vector<1x2x128xf32>,
    return
  }
  func.func @transform_0(%arg0: i32) -> (i32, i32, i32) {
    %c0_i32 = arith.constant 0 : i32
    %c0_i32_0 = arith.constant 0 : i32
    %c0_i32_1 = arith.constant 0 : i32
    return %arg0, %c0_i32, %c0_i32_0 : i32, i32, i32
  }
  func.func @transform_1(%arg0: i32) -> (i32, i32, i32) {
    %c0_i32 = arith.constant 0 : i32
    %c0_i32_0 = arith.constant 0 : i32
    %c0_i32_1 = arith.constant 0 : i32
    return %arg0, %c0_i32, %c0_i32_0 : i32, i32, i32
  }
  func.func @transform_2(%arg0: i32) -> (i32, i32) {
    %c0_i32 = arith.constant 0 : i32
    %c0_i32_0 = arith.constant 0 : i32
    %c0_i32_1 = arith.constant 0 : i32
    return %c0_i32, %c0_i32_0 : i32, i32
  }
  func.func @transform_3(%arg0: i32) -> (i32, i32) {
    %c0_i32 = arith.constant 0 : i32
    %c0_i32_0 = arith.constant 0 : i32
    %c0_i32_1 = arith.constant 0 : i32
    return %c0_i32, %c0_i32_0 : i32, i32
  }
  func.func @transform_4(%arg0: i32) -> (i32, i32) {
    %c0_i32 = arith.constant 0 : i32
    %c0_i32_0 = arith.constant 0 : i32
    %c0_i32_1 = arith.constant 0 : i32
    return %c0_i32, %c0_i32_0 : i32, i32
  }
  func.func @transform_5(%arg0: i32) -> (i32, i32) {
    %c0_i32 = arith.constant 0 : i32
    %c0_i32_0 = arith.constant 0 : i32
    %c0_i32_1 = arith.constant 0 : i32
    return %c0_i32, %c0_i32_0 : i32, i32
  }
  func.func @transform_6(%arg0: i32) -> (i32, i32) {
    %c0_i32 = arith.constant 0 : i32
    %c0_i32_0 = arith.constant 0 : i32
    %c0_i32_1 = arith.constant 0 : i32
    return %c0_i32, %c0_i32_0 : i32, i32
  }
  func.func @transform_7(%arg0: i32) -> (i32, i32) {
    %c0_i32 = arith.constant 0 : i32
    %c0_i32_0 = arith.constant 0 : i32
    %c0_i32_1 = arith.constant 0 : i32
    return %c0_i32, %c0_i32_0 : i32, i32
  }
  func.func @transform_8(%arg0: i32) -> (i32, i32, i32) {
    %c0_i32 = arith.constant 0 : i32
    %c0_i32_0 = arith.constant 0 : i32
    %c0_i32_1 = arith.constant 0 : i32
    return %arg0, %c0_i32, %c0_i32_0 : i32, i32, i32
  }
}

</mosaic_0001>

<bundles_post_ra>
// kernel: tpu_custom_call.1
= control target key start
LH: loop header
LB: loop body
LE: loop exit
PB: predicated region body
PF: predicated region fallthrough
CT: control target
= control target key end

     0   :  { %13 = vsyncpa [#allocation3], 0  ;;  %s827_s0 = inlined_call_operand.vmem [shape: bf16[1,16,16], index: 0, kind: input, shape index: {}]   ;;  %s828_s1 = inlined_call_operand.vmem [shape: bf16[1,16,8], index: 1, kind: input, shape index: {}]   ;;  %s829_s2 = inlined_call_operand.vmem [shape: bf16[8,128], index: 2, kind: input, shape index: {}]   ;;  %s830_s3 = inlined_call_operand.vmem [shape: f32[1,128], index: 3, kind: input, shape index: {}]   ;;  %s831_s4 = inlined_call_operand.hbm [shape: bf16[128,128], index: 4, kind: input, shape index: {}]   ;;  %s832_s5 = inlined_call_operand.vmem [shape: f32[1,128], index: 5, kind: input, shape index: {}]   ;;  %s833_s6 = inlined_call_operand.hbm [shape: bf16[128,128], index: 6, kind: input, shape index: {}]   ;;  %s834_s7 = inlined_call_operand.vmem [shape: f32[1,128], index: 7, kind: input, shape index: {}]   ;;  %s835_s8 = inlined_call_operand.hbm [shape: f32[1,2,128], index: 8, kind: output, shape index: {}]  }
   0x1   :  { %14 = vsyncpa [#allocation6], 0 }
   0x2   :  { %15 = vsyncpa [#allocation4], 0  ;;  %s690_s27 = smov [#allocation2]   ;;  %s618_s9 = scalar_lea.hbm %s831_s4, 1024 }
   0x3   :  { %s29_s28 = sshll.u32 %s690_s27, 4  ;;  %p619_p0 = scmp.ne.s32.totalorder %s831_s4, %s618_s9  ;;  %s30_s28 = int_to_ptr.vmem [resolvable:$true] %s29_s28 }
   0x4   :  { %p622_p1 = scmp.lt.u32.totalorder %s618_s9, %s831_s4 }
   0x6   :  { %p624_p2 = pnand %p622_p1, %p619_p0 }
   0x8   :  { %627 = shalt.err (!%p624_p2)
}
   0x9   :  { %s628_s14 = scalar_lea.vmem %s30_s28, 1024  ;;  %p633_p4 = scmp.lt.s32.totalorder %s30_s28, %s30_s28 }
   0xa   :  { %p629_p3 = scmp.ne.s32.totalorder %s30_s28, %s628_s14  ;;  %p634_p5 = scmp.lt.s32.totalorder %s628_s14, %s628_s14 }
   0xc   :  { %p635_p6 = por %p634_p5, %p633_p4 }
   0xe   :  { %p636_p7 = pnand %p635_p6, %p629_p3 }
  0x10   :  { %639 = shalt.err (!%p636_p7)
}
  0x11   :  { %s691_s15 = smov 64   ;;  %s692_s16 = smov 4  }
  0x12   :  { %35 = dma.hbm_to_vmem [thread:$0]  %s831_s4, 1024, %s30_s28, [#allocation3], %s691_s15, %s691_s15, %s692_s16  }
  0x13   :  { %s693_s19 = smov [#allocation5]   ;;  %s640_s23 = scalar_lea.hbm %s833_s6, 1024 }
  0x14   :  { %s43_s20 = sshll.u32 %s693_s19, 4  ;;  %p641_p8 = scmp.ne.s32.totalorder %s833_s6, %s640_s23  ;;  %s44_s20 = int_to_ptr.vmem [resolvable:$true] %s43_s20 }
  0x15   :  { %p644_p9 = scmp.lt.u32.totalorder %s640_s23, %s833_s6 }
  0x17   :  { %p646_p10 = pnand %p644_p9, %p641_p8 }
  0x19   :  { %649 = shalt.err (!%p646_p10)
}
  0x1a   :  { %s650_s29 = scalar_lea.vmem %s44_s20, 1024  ;;  %p655_p12 = scmp.lt.s32.totalorder %s44_s20, %s44_s20 }
  0x1b   :  { %p651_p11 = scmp.ne.s32.totalorder %s44_s20, %s650_s29  ;;  %p656_p13 = scmp.lt.s32.totalorder %s650_s29, %s650_s29 }
  0x1d   :  { %p657_p0 = por %p656_p13, %p655_p12 }
  0x1f   :  { %p658_p1 = pnand %p657_p0, %p651_p11 }
  0x21   :  { %661 = shalt.err (!%p658_p1)
}
  0x22   :  { %49 = dma.hbm_to_vmem [thread:$0]  %s833_s6, 1024, %s44_s20, [#allocation6], %s691_s15, %s691_s15, %s692_s16  }
  0x23   :  { %684 = dma.done.wait [#allocation3], 1024  }
  0x24   :  { %685 = vsyncadd [#allocation3], 4294966272 }
  0x25   :  { %686 = dma.done.wait [#allocation6], 1024  }
  0x26   :  { %687 = vsyncadd [#allocation6], 4294966272  ;;  %v694_v0 = vmov 0.0   ;;  %vm695_vm0 = vmmov 0   ;;  %vm73_vm1 = vcmask 1043456   ;;  %vm69_vm2 = vcmask 64512  }
  0x27   :  { %535 = vmatprep.subr.bf16.mxu0 %v694_v0  ;;  %537 = vmatprep.mubr.msk.bf16.mxu0 %vm695_vm0, %v694_v0  ;;  %v63_v1 = vld [vmem:[%s829_s2] sm:$0xf]  ;;  %v603_v5 = vld [vmem:[#allocation2 + $0x8] sm:$0xff]   ;;  %v604_v6 = vld [vmem:[#allocation2 + $0x10] sm:$0xff]   ;;  %vm131_vm3 = vcmask 130048   ;;  %vm378_vm4 = vcmask 1041409  }
  0x28   :  { %541 = vmatprep.subr.bf16.mxu1 %v694_v0  ;;  %543 = vmatprep.mubr.msk.bf16.mxu1 %vm695_vm0, %v694_v0  ;;  %v75_v2 = vsel %vm73_vm1, %v63_v1, 0  ;;  %v600_v3 = vld [vmem:[%s828_s1] sm:$0xff]   ;;  %v605_v7 = vld [vmem:[#allocation2 + $0x18] sm:$0xff]   ;;  %v607_v9 = vld [vmem:[#allocation2 + $0x28] sm:$0xff]   ;;  %s696_s14 = smov [#allocation7]  }
  0x29   :  { %536 = vmatpush3.bf16.msra.mxu0 %v75_v2  ;;  %v602_v4 = vld [vmem:[#allocation2] sm:$0xff]   ;;  %v608_v16 = vld [vmem:[#allocation2 + $0x30] sm:$0xff]   ;;  %v609_v17 = vld [vmem:[#allocation2 + $0x38] sm:$0xff]   ;;  %s477_s15 = sshll.u32 %s696_s14, 4  ;;  %s478_s15 = int_to_ptr.vmem [resolvable:$true] %s477_s15 }
  0x2a   :  { %547 = vmatprep.subr.bf16.mxu0 %v694_v0  ;;  %v606_v8 = vld [vmem:[#allocation2 + $0x20] sm:$0xff]   ;;  %v611_v34 = vld [vmem:[#allocation5 + $0x8] sm:$0xff]   ;;  %v612_v35 = vld [vmem:[#allocation5 + $0x10] sm:$0xff]   ;;  %s662_s16 = scalar_lea.vmem %s478_s15, 32  ;;  %p667_p3 = scmp.lt.s32.totalorder %s478_s15, %s478_s15 }
  0x2b   :  { %v601_v15 = vld [vmem:[%s827_s0] sm:$0xff]   ;;  %v613_v36 = vld [vmem:[#allocation5 + $0x18] sm:$0xff]   ;;  %v615_v38 = vld [vmem:[#allocation5 + $0x28] sm:$0xff]   ;;  %p663_p2 = scmp.ne.s32.totalorder %s478_s15, %s662_s16  ;;  %p668_p4 = scmp.lt.s32.totalorder %s662_s16, %s662_s16 }
  0x2c   :  { %538 = vmatmul.mubr.msk.bf16.vlgmr.msra.gmra.mrb[0].mxu0 %vm69_vm2, %v600_v3  ;;  %v489_v18 = vld [vmem:[%s830_s3] ss:$0 sm:$0xff]  ;;  %v616_v39 = vld [vmem:[#allocation5 + $0x30] sm:$0xff]   ;;  %v617_v40 = vld [vmem:[#allocation5 + $0x38] sm:$0xff]  }
  0x2d   :  { %563 = vmatprep.mubr.msk.bf16.mxu0 %vm695_vm0, %v694_v0  ;;  %548 = vmatpush3.bf16.msra.mxu0 %v602_v4  ;;  %v610_v33 = vld [vmem:[#allocation5] sm:$0xff]   ;;  %p669_p5 = por %p668_p4, %p667_p3 }
  0x2e   :  { %549 = vmatprep.subr.bf16.mxu0 %v694_v0  ;;  %v614_v37 = vld [vmem:[#allocation5 + $0x20] sm:$0xff]  }
  0x2f   :  { %v500_v41 = vld [vmem:[%s832_s5] ss:$0 sm:$0xff]  ;;  %p670_p6 = pnand %p669_p5, %p663_p2 }
  0x31   :  { %550 = vmatpush3.bf16.msra.mxu0 %v603_v5 }
  0x32   :  { %551 = vmatprep.subr.bf16.mxu0 %v694_v0 }
  0x35   :  { %552 = vmatpush3.bf16.msra.mxu0 %v604_v6  ;;  %v502_v6 = vld [vmem:[%s834_s7] ss:$0 sm:$0xff] }
  0x36   :  { %553 = vmatprep.subr.bf16.mxu0 %v694_v0 }
  0x39   :  { %554 = vmatpush3.bf16.msra.mxu0 %v605_v7 }
  0x3a   :  { %555 = vmatprep.subr.bf16.mxu0 %v694_v0 }
  0x3d   :  { %556 = vmatpush3.bf16.msra.mxu0 %v606_v8 }
  0x3e   :  { %557 = vmatprep.subr.bf16.mxu0 %v694_v0 }
  0x41   :  { %558 = vmatpush3.bf16.msra.mxu0 %v607_v9 }
  0x42   :  { %559 = vmatprep.subr.bf16.mxu0 %v694_v0 }
  0x45   :  { %560 = vmatpush3.bf16.msra.mxu0 %v608_v16 }
  0x46   :  { %561 = vmatprep.subr.bf16.mxu0 %v694_v0 }
  0x49   :  { %562 = vmatpush3.bf16.msra.mxu0 %v609_v17 }
  0xff   :  { %v111_v10 = vpop.f32.mrb[0].mxu0 }
 0x100   :  { %v539_v11 = vpop.f32.mrb[1].mxu0 }
 0x101   :  { %v114_v12 = vpop.f32.mrb[2].mxu0 }
 0x102   :  { %v118_v13 = vpack.c.bf16 %v114_v12, %v111_v10  ;;  %v540_v14 = vpop.f32.mrb[3].mxu0 }
 0x104   :  { %542 = vmatpush3.bf16.msra.mxu1 %v118_v13 }
 0x105   :  { %567 = vmatprep.subr.bf16.mxu1 %v694_v0 }
 0x107   :  { %544 = vmatmul.mubr.msk.bf16.vlgmr.msra.gmra.mrb[0].mxu1 %vm131_vm3, %v601_v15 }
 0x108   :  { %569 = vmatprep.mubr.msk.bf16.mxu1 %vm695_vm0, %v694_v0 }
 0x1da   :  { %v169_v19 = vpop.f32.mrb[0].mxu1 }
 0x1db   :  { %v170_v20 = vadd.f32 %v489_v18, %v169_v19  ;;  %v545_v21 = vpop.f32.mrb[1].mxu1 }
 0x1dc   :  { %v172_v22 = vpop.f32.mrb[2].mxu1 }
 0x1dd   :  { %v173_v23 = vadd.f32 %v489_v18, %v172_v22  ;;  %v546_v24 = vpop.f32.mrb[3].mxu1  ;;  %v176_v25 = vmax.f32 %v170_v20, 0.0 }
 0x1df   :  { %v177_v26 = vmax.f32 %v173_v23, 0.0 }
 0x1e1   :  { %v178_v27 = vpack.c.bf16 %v177_v26, %v176_v25 }
 0x1e3   :  { %564 = vmatmul.mubr.bf16.vlgmr.msra.gmra.mrb[4].mxu0 %v178_v27 }
 0x2b6   :  { %v277_v28 = vpop.f32.mrb[4].mxu0 }
 0x2b7   :  { %v565_v29 = vpop.f32.mrb[5].mxu0 }
 0x2b8   :  { %v280_v30 = vpop.f32.mrb[6].mxu0 }
 0x2b9   :  { %v284_v31 = vpack.c.bf16 %v280_v30, %v277_v28  ;;  %v566_v32 = vpop.f32.mrb[7].mxu0 }
 0x2bb   :  { %568 = vmatpush3.bf16.msra.mxu1 %v284_v31 }
 0x2bc   :  { %573 = vmatprep.subr.bf16.mxu1 %v694_v0 }
 0x2be   :  { %570 = vmatmul.mubr.msk.bf16.vlgmr.msra.gmra.mrb[4].mxu1 %vm131_vm3, %v601_v15 }
 0x2bf   :  { %574 = vmatpush3.bf16.msra.mxu1 %v610_v33  ;;  %589 = vmatprep.mubr.msk.bf16.mxu1 %vm695_vm0, %v694_v0 }
 0x2c0   :  { %575 = vmatprep.subr.bf16.mxu1 %v694_v0 }
 0x2c3   :  { %576 = vmatpush3.bf16.msra.mxu1 %v611_v34 }
 0x2c4   :  { %577 = vmatprep.subr.bf16.mxu1 %v694_v0 }
 0x2c7   :  { %578 = vmatpush3.bf16.msra.mxu1 %v612_v35 }
 0x2c8   :  { %579 = vmatprep.subr.bf16.mxu1 %v694_v0 }
 0x2cb   :  { %580 = vmatpush3.bf16.msra.mxu1 %v613_v36 }
 0x2cc   :  { %581 = vmatprep.subr.bf16.mxu1 %v694_v0 }
 0x2cf   :  { %582 = vmatpush3.bf16.msra.mxu1 %v614_v37 }
 0x2d0   :  { %583 = vmatprep.subr.bf16.mxu1 %v694_v0 }
 0x2d3   :  { %584 = vmatpush3.bf16.msra.mxu1 %v615_v38 }
 0x2d4   :  { %585 = vmatprep.subr.bf16.mxu1 %v694_v0 }
 0x2d7   :  { %586 = vmatpush3.bf16.msra.mxu1 %v616_v39 }
 0x2d8   :  { %587 = vmatprep.subr.bf16.mxu1 %v694_v0 }
 0x2db   :  { %588 = vmatpush3.bf16.msra.mxu1 %v617_v40 }
 0x391   :  { %v326_v42 = vpop.f32.mrb[4].mxu1 }
 0x392   :  { %v327_v43 = vadd.f32 %v500_v41, %v326_v42  ;;  %v571_v44 = vpop.f32.mrb[5].mxu1 }
 0x393   :  { %v329_v45 = vpop.f32.mrb[6].mxu1 }
 0x394   :  { %v333_v46 = vmax.f32 %v327_v43, 0.0  ;;  %v330_v47 = vadd.f32 %v500_v41, %v329_v45  ;;  %v572_v48 = vpop.f32.mrb[7].mxu1 }
 0x396   :  { %v335_v49 = vrot.slane %v333_v46, 4  ;;  %v334_v50 = vmax.f32 %v330_v47, 0.0 }
 0x398   :  { %v336_v51 = vadd.f32 %v335_v49, %v333_v46  ;;  %v341_v52 = vrot.slane %v334_v50, 4 }
 0x39a   :  { %v337_v53 = vrot.slane %v336_v51, 2  ;;  %v342_v54 = vadd.f32 %v341_v52, %v334_v50 }
 0x39c   :  { %v338_v55 = vadd.f32 %v337_v53, %v336_v51  ;;  %v343_v56 = vrot.slane %v342_v54, 2 }
 0x39e   :  { %v339_v57 = vrot.slane %v338_v55, 1  ;;  %v344_v58 = vadd.f32 %v343_v56, %v342_v54 }
 0x3a0   :  { %v340_v59 = vadd.f32 %v339_v57, %v338_v55  ;;  %v345_v60 = vrot.slane %v344_v58, 1 }
 0x3a2   :  { %v347_v61 = vmul.f32 0.125, %v340_v59  ;;  %v346_v62 = vadd.f32 %v345_v60, %v344_v58 }
 0x3a4   :  { %v349_v63 = vpack.c.bf16 %v347_v61, %v347_v61  ;;  %v348_v0 = vmul.f32 0.125, %v346_v62 }
 0x3a6   :  { %v350_v1 = vpack.c.bf16 %v348_v0, %v348_v0  ;;  %v376_v2 = vunpack.c.l.b16 %v349_v63 }
 0x3a8   :  { %v377_v3 = vunpack.c.l.b16 %v350_v1 }
 0x3aa   :  { %v379_v4 = vsel %vm378_vm4, %v377_v3, %v376_v2 }
 0x3ab   :  { %v380_v5 = vpack.c.b16 %v379_v4, %v379_v4 }
 0x3ad   :  { %590 = vmatmul.mubr.bf16.vlgmr.msra.gmra.mrb[8].mxu1 %v380_v5 }
 0x480   :  { %v464_v7 = vpop.f32.mrb[8].mxu1 }
 0x481   :  { %v465_v8 = vadd.f32 %v502_v6, %v464_v7  ;;  %v591_v9 = vpop.f32.mrb[9].mxu1 }
 0x482   :  { %v467_v10 = vpop.f32.mrb[10].mxu1 }
 0x483   :  { %470 = vst [vmem:[#allocation7] sm:$0x3] %v465_v8  ;;  %v592_v11 = vpop.f32.mrb[11].mxu1 }
 0x484   :  { %673 = shalt.err (!%p670_p6)
}
 0x485   :  { %s674_s7 = scalar_lea.hbm %s835_s8, 32 }
 0x486   :  { %p675_p7 = scmp.ne.s32.totalorder %s835_s8, %s674_s7  ;;  %p678_p8 = scmp.lt.u32.totalorder %s674_s7, %s835_s8 }
 0x488   :  { %p680_p9 = pnand %p678_p8, %p675_p7 }
 0x48a   :  { %683 = shalt.err (!%p680_p9)
}
 0x48b   :  { %480 = dma.vmem_to_hbm [thread:$0]  %s478_s15, 32, %s835_s8, [#allocation4]  }
 0x48c   :  { %688 = dma.done.wait [#allocation4], 32  }
 0x48d   :  { %689 = vsyncadd [#allocation4], 4294967264 }
 0x48e   :  { %484 = vsyncpa [#allocation3], 1 }
 0x48f   :  { %485 = vsyncpa [#allocation6], 1 }
 0x490   :  { %486 = vsyncpa [#allocation4], 1 }

</bundles_post_ra>
